<compile_context>
chip_gen: v7x
topology: tpu7x:2x2x1
jax: 0.10.0
libtpu: 0.0.40
codegen_flags: <defaults>
</compile_context>

<pallas_src>
import functools

import jax
import jax.numpy as jnp
from jax.experimental import pallas as pl
from jax.experimental.pallas import tpu as pltpu


def _group_norm_kernel(x_ref, w_ref, b_ref, o_ref, *, eps: float):
    """Normalizes each row of the block independently (row == one group)."""
    # x_ref / o_ref: (R, L) rows are normalization groups, L = Cg*H*W.
    # w_ref / b_ref: (R, L) pre-broadcast per-channel affine (f32, resident).
    x = x_ref[...].astype(jnp.float32)
    inv_n = jnp.float32(1.0 / x.shape[-1])

    # One-pass statistics: E[x] and E[x^2] in a single sweep (f32 accumulate).
    mean = jnp.sum(x, axis=-1, keepdims=True) * inv_n           # (R, 1)
    ex2 = jnp.sum(x * x, axis=-1, keepdims=True) * inv_n        # (R, 1)
    var = ex2 - mean * mean
    inv_std = jax.lax.rsqrt(var + jnp.float32(eps))             # (R, 1)

    # Folded affine: y = (x - mean) * inv_std * w + b == x * scale + shift.
    scale = inv_std * w_ref[...]                                # (R, L)
    shift = b_ref[...] - mean * scale                           # (R, L)
    o_ref[...] = (x * scale + shift).astype(o_ref.dtype)


def group_norm(x, weight, bias, *, num_groups=32, min_channels_per_group=4,
               eps=1e-5):
    """Pallas equivalent of GroupNorm.forward on (N, C, H, W) input."""
    N, C, H, W = x.shape
    G = min(num_groups, C // min_channels_per_group)
    assert G >= 1 and C % G == 0, (C, G)
    Cg = C // G
    HW = H * W
    L = Cg * HW                       # elements per normalization group

    # Rows-as-groups layout: lane-dense last dim, one group per row.
    x2 = x.reshape(N * G, L)

    # Pre-broadcast the per-channel affine into the same row layout (f32) so
    # the kernel is a single FMA with no in-kernel reshapes/gathers.
    w_rows = jnp.broadcast_to(
        weight.astype(jnp.float32).reshape(G, Cg, 1), (G, Cg, HW)).reshape(G, L)
    b_rows = jnp.broadcast_to(
        bias.astype(jnp.float32).reshape(G, Cg, 1), (G, Cg, HW)).reshape(G, L)

    # f32 needs row blocks in multiples of 8 sublanes (16 for 2-byte dtypes).
    itemsize = jnp.dtype(x.dtype).itemsize
    sublane = 8 * 4 // itemsize
    if G % sublane == 0:
        # Main path: one batch element (all of its G groups) per grid step.
        rows_per_block, grid = G, (N,)
        x_index = lambda n: (n, 0)
        wb_index = lambda n: (0, 0)        # constant -> table stays resident
        w_full, b_full = w_rows, b_rows
    else:
        # Fallback: a single full-extent block (always a legal block shape).
        # TODO(synk): padded/masked multi-step path for shapes where G is not
        # a sublane multiple and N*G is too large for one block.
        rows_per_block, grid = N * G, (1,)
        x_index = lambda n: (0, 0)
        wb_index = lambda n: (0, 0)
        w_full = jnp.tile(w_rows, (N, 1))
        b_full = jnp.tile(b_rows, (N, 1))

    # VMEM budget: double-buffered in/out blocks + resident affine tables +
    # f32 temporaries; clamp below v7x's 64 MiB physical VMEM.
    block_bytes = rows_per_block * L * itemsize
    table_bytes = 2 * w_full.shape[0] * L * 4
    est = 4 * block_bytes + table_bytes + 4 * rows_per_block * L * 4
    vmem_limit = int(min(max(2 * est, 32 * 1024 * 1024), 48 * 1024 * 1024))

    kernel = functools.partial(_group_norm_kernel, eps=eps)
    out = pl.pallas_call(
        kernel,
        out_shape=jax.ShapeDtypeStruct((N * G, L), x.dtype),
        grid_spec=pltpu.PrefetchScalarGridSpec(
            num_scalar_prefetch=0,
            grid=grid,
            in_specs=[
                pl.BlockSpec((rows_per_block, L), x_index),
                pl.BlockSpec((rows_per_block, L), wb_index),
                pl.BlockSpec((rows_per_block, L), wb_index),
            ],
            out_specs=pl.BlockSpec((rows_per_block, L), x_index),
        ),
        compiler_params=pltpu.CompilerParams(
            dimension_semantics=("parallel",),
            vmem_limit_bytes=vmem_limit),
    )(x2, w_full, b_full)
    return out.reshape(N, C, H, W)


def _reference(x, weight, bias, num_groups, eps):
    N, C, H, W = x.shape
    xr = x.reshape(N, num_groups, -1).astype(jnp.float32)
    mean = jnp.mean(xr, axis=-1, keepdims=True)
    var = jnp.mean((xr - mean) ** 2, axis=-1, keepdims=True)
    xn = ((xr - mean) / jnp.sqrt(var + eps)).reshape(N, C, H, W)
    out = (xn * weight.reshape(1, C, 1, 1).astype(jnp.float32)
           + bias.reshape(1, C, 1, 1).astype(jnp.float32))
    return out.astype(x.dtype)


if __name__ == "__main__":
    key = jax.random.PRNGKey(0)
    k1, k2, k3 = jax.random.split(key, 3)

    # GroupNorm(num_channels=32) -> G = min(32, 32 // 4) = 8 groups of 4 chans.
    N, C, H, W = 2, 32, 16, 16
    x = jax.random.normal(k1, (N, C, H, W), dtype=jnp.float32)
    weight = 1.0 + 0.1 * jax.random.normal(k2, (C,), dtype=jnp.float32)
    bias = 0.1 * jax.random.normal(k3, (C,), dtype=jnp.float32)

    out = group_norm(x, weight, bias)
    out = jax.block_until_ready(out)

    G = min(32, C // 4)
    ref = _reference(x, weight, bias, G, 1e-5)
    assert out.shape == x.shape
    assert out.dtype == x.dtype
    max_err = jnp.max(jnp.abs(out - ref))
    assert jnp.allclose(out, ref, atol=1e-4, rtol=1e-4), f"max abs err {max_err}"

    print("KERNEL_OK")
</pallas_src>

<mosaic_0001>
module attributes {stable_mosaic.version = 11 : i64} {
  func.func @_group_norm_kernel(%arg0: i32, %arg1: memref<8x1024xf32, #tpu.memory_space<vmem>>, %arg2: memref<8x1024xf32, #tpu.memory_space<vmem>>, %arg3: memref<8x1024xf32, #tpu.memory_space<vmem>>, %arg4: memref<8x1024xf32, #tpu.memory_space<vmem>>) attributes {dimension_semantics = [#tpu.dimension_semantics<parallel>], iteration_bounds = array<i64: 2>, scalar_prefetch = 0 : i64, scratch_operands = 0 : i64, tpu.core_type = #tpu.core_type<tc>, window_params = [{transform_indices = @transform_0, window_bounds = array<i64: 8, 1024>}, {pipeline_mode = #tpu.pipeline_mode<synchronous>, transform_indices = @transform_1, window_bounds = array<i64: 8, 1024>}, {pipeline_mode = #tpu.pipeline_mode<synchronous>, transform_indices = @transform_2, window_bounds = array<i64: 8, 1024>}, {transform_indices = @transform_3, window_bounds = array<i64: 8, 1024>}]} {
    %c0 = arith.constant 0 : index
    %c0_0 = arith.constant 0 : index
    %0 = vector.load %arg1[%c0, %c0_0] : memref<8x1024xf32, #tpu.memory_space<vmem>>, vector<8x1024xf32>
    %cst = arith.constant dense<0.000000e+00> : vector<8xf32>
    %1 = vector.multi_reduction <add>, %0, %cst [1] : vector<8x1024xf32> to vector<8xf32>
    %2 = vector.shape_cast %1 : vector<8xf32> to vector<8x1xf32>
    %cst_1 = arith.constant 9.765625E-4 : f32
    %3 = vector.broadcast %cst_1 : f32 to vector<8x1xf32>
    %4 = arith.mulf %2, %3 : vector<8x1xf32>
    %5 = arith.mulf %0, %0 : vector<8x1024xf32>
    %cst_2 = arith.constant dense<0.000000e+00> : vector<8xf32>
    %6 = vector.multi_reduction <add>, %5, %cst_2 [1] : vector<8x1024xf32> to vector<8xf32>
    %7 = vector.shape_cast %6 : vector<8xf32> to vector<8x1xf32>
    %cst_3 = arith.constant 9.765625E-4 : f32
    %8 = vector.broadcast %cst_3 : f32 to vector<8x1xf32>
    %9 = arith.mulf %7, %8 : vector<8x1xf32>
    %10 = arith.mulf %4, %4 : vector<8x1xf32>
    %11 = arith.subf %9, %10 : vector<8x1xf32>
    %cst_4 = arith.constant 9.99999974E-6 : f32
    %12 = vector.broadcast %cst_4 : f32 to vector<8x1xf32>
    %13 = arith.addf %11, %12 : vector<8x1xf32>
    %14 = math.rsqrt %13 : vector<8x1xf32>
    %c0_5 = arith.constant 0 : index
    %c0_6 = arith.constant 0 : index
    %15 = vector.load %arg2[%c0_5, %c0_6] : memref<8x1024xf32, #tpu.memory_space<vmem>>, vector<8x1024xf32>
    %16 = vector.broadcast %14 : vector<8x1xf32> to vector<8x1024xf32>
    %17 = arith.mulf %16, %15 : vector<8x1024xf32>
    %c0_7 = arith.constant 0 : index
    %c0_8 = arith.constant 0 : index
    %18 = vector.load %arg3[%c0_7, %c0_8] : memref<8x1024xf32, #tpu.memory_space<vmem>>, vector<8x1024xf32>
    %19 = vector.broadcast %4 : vector<8x1xf32> to vector<8x1024xf32>
    %20 = arith.mulf %19, %17 : vector<8x1024xf32>
    %21 = arith.subf %18, %20 : vector<8x1024xf32>
    %22 = arith.mulf %0, %17 : vector<8x1024xf32>
    %23 = arith.addf %22, %21 : vector<8x1024xf32>
    %c0_9 = arith.constant 0 : index
    %c0_10 = arith.constant 0 : index
    %24 = vector.load %arg4[%c0_9, %c0_10] : memref<8x1024xf32, #tpu.memory_space<vmem>>, vector<8x1024xf32>
    tpu.vector_store %arg4[%c0_9, %c0_10], %23 {strides = array<i32>} : memref<8x1024xf32, #tpu.memory_space<vmem>>, vector<8x1024xf32>,
    return
  }
  func.func @transform_0(%arg0: i32) -> (i32, i32) {
    %c0_i32 = arith.constant 0 : i32
    %c0_i32_0 = arith.constant 0 : i32
    return %arg0, %c0_i32 : i32, i32
  }
  func.func @transform_1(%arg0: i32) -> (i32, i32) {
    %c0_i32 = arith.constant 0 : i32
    %c0_i32_0 = arith.constant 0 : i32
    %c0_i32_1 = arith.constant 0 : i32
    return %c0_i32, %c0_i32_0 : i32, i32
  }
  func.func @transform_2(%arg0: i32) -> (i32, i32) {
    %c0_i32 = arith.constant 0 : i32
    %c0_i32_0 = arith.constant 0 : i32
    %c0_i32_1 = arith.constant 0 : i32
    return %c0_i32, %c0_i32_0 : i32, i32
  }
  func.func @transform_3(%arg0: i32) -> (i32, i32) {
    %c0_i32 = arith.constant 0 : i32
    %c0_i32_0 = arith.constant 0 : i32
    return %arg0, %c0_i32 : i32, i32
  }
}

</mosaic_0001>

<bundles_post_ra>
// kernel: tpu_custom_call.1
= control target key start
LH: loop header
LB: loop body
LE: loop exit
PB: predicated region body
PF: predicated region fallthrough
CT: control target
= control target key end

     0   :  { %8 = vsyncpa [#allocation3], 0  ;;  %s968_s0 = inlined_call_operand.hbm [shape: f32[16,1024], index: 0, kind: input, shape index: {}]   ;;  %s969_s1 = inlined_call_operand.hbm [shape: f32[8,1024], index: 1, kind: input, shape index: {}]   ;;  %s970_s2 = inlined_call_operand.hbm [shape: f32[8,1024], index: 2, kind: input, shape index: {}]   ;;  %s971_s3 = inlined_call_operand.hbm [shape: f32[16,1024], index: 3, kind: output, shape index: {}]  }
   0x1   :  { %10 = vsyncpa [#allocation3 + $0x1], 0 }
   0x2   :  { %11 = vsyncpa [#allocation6], 0 }
   0x3   :  { %12 = vsyncpa [#allocation4], 0 }
   0x4   :  { %14 = vsyncpa [#allocation4 + $0x1], 0  ;;  %s691_s12 = smov 0   ;;  %s693_s13 = smov 0  }
   0x5   :  { %s695_s14 = smov 0   ;;  %s697_s15 = smov 0  }
   0x6 LB: > { %s712_s16 = sadd.s32 4294967295, %s665_s15   ;;  %s420_s17 = sadd.s32 4294967294, %s665_s15   ;;  %s665_s15 = sphi %s697_s15, %s991_s15   ;;  %s661_s14 = sphi %s695_s14, %s990_s14   ;;  %s657_s13 = sphi %s693_s13, %s989_s13   ;;  %s653_s12 = sphi %s691_s12, %s988_s12  }
   0x7   : > { %p40_p0 = scmp.ne.s32.totalorder %s657_s13, %s653_s12  ;;  %p972_p1 = scmp.eq.s32.totalorder %s712_s16, 0 }
   0x8   : > { %p112_p3 = scmp.eq.s32.totalorder %s420_s17, 1  ;;  %p421_p5 = scmp.ge.s32.totalorder %s665_s15, 1 }
   0x9   : > { %p721_p4 = por %p972_p1, %p40_p0  ;;  %p119_p7 = scmp.lt.s32.totalorder %s665_s15, 3 }
   0xa   : > { %p726_p6 = por %p112_p3, %p40_p0  ;;  %s667_s21 = smov [#allocation5]  }
   0xb   : > { %s975_s18 = scalar_select %p721_p4, 1, 0 }
   0xc   : > { %s976_s19 = scalar_select %p726_p6, 1, 0 }
   0xd   : > { %p731_p8 = pnand %p421_p5, %p119_p7  ;;  %s132_s22 = sshll.u32 %s667_s21, 4  ;;  %s133_s22 = int_to_ptr.vmem [resolvable:$true] %s132_s22 }
   0xe   : > { %s668_s23 = smov [#allocation7]   ;;  %s747_s26 = sadd.s32 1, %s665_s15  }
   0xf   : > { %s977_s20 = scalar_select %p731_p8, 1, 0 }
  0x10   : > { %p452_p10 = pneg %p731_p8  ;;  %s143_s24 = sshll.u32 %s668_s23, 4  ;;  %s744_s24 = int_to_ptr.vmem [resolvable:$true] %s143_s24 }
  0x11   : > { %s24_s27 = ssub.s32 %s665_s15, %s747_s26  ;;  %s509_s30 = scalar_lea.hbm %s969_s1, 1024 }
  0x12   : > { %p740_p11 = pnand %p452_p10, %p972_p1  ;;  %p510_p12 = scmp.ne.s32.totalorder %s969_s1, %s509_s30 }
  0x13   : > { %p516_p5 = scmp.lt.u32.totalorder %s509_s30, %s969_s1 }
  0x14   : > { %p511_p13 = pneg %p740_p11 }
  0x16   : > { %p512_p0 = pnand %p511_p13, %p510_p12 }
  0x18   : > { %p513_p3 = pneg %p512_p0 }
  0x1a   : > { %p518_p7 = pnand %p516_p5, %p513_p3 }
  0x1c   : > { %521 = shalt.err (!%p518_p7)
}
  0x1d   : > { %s522_s8 = scalar_lea.vmem %s133_s22, 1024  ;;  %p530_p2 = scmp.lt.s32.totalorder %s133_s22, %s133_s22 }
  0x1e   : > { %p523_p10 = scmp.ne.s32.totalorder %s133_s22, %s522_s8  ;;  %p531_p6 = scmp.lt.s32.totalorder %s522_s8, %s522_s8 }
  0x20   : > { %p525_p9 = pnand %p523_p10, %p511_p13  ;;  %p532_p4 = por %p531_p6, %p530_p2 }
  0x22   : > { %p526_p1 = pneg %p525_p9 }
  0x24   : > { %p533_p8 = pnand %p532_p4, %p526_p1 }
  0x26   : > { %536 = shalt.err (!%p533_p8)
}
  0x27   : > { %455 = dma.hbm_to_vmem [thread:$0]  (!%p740_p11), %s969_s1, 1024, %s133_s22, [#allocation6]  }
  0x28   : > { %s537_s21 = scalar_lea.hbm %s970_s2, 1024 }
  0x29   : > { %p538_p9 = scmp.ne.s32.totalorder %s970_s2, %s537_s21  ;;  %p544_p4 = scmp.lt.u32.totalorder %s537_s21, %s970_s2 }
  0x2b   : > { %p540_p2 = pnand %p538_p9, %p511_p13 }
  0x2d   : > { %p541_p1 = pneg %p540_p2 }
  0x2f   : > { %p546_p6 = pnand %p544_p4, %p541_p1 }
  0x31   : > { %549 = shalt.err (!%p546_p6)
}
  0x32   : > { %s550_s22 = scalar_lea.vmem %s744_s24, 1024  ;;  %p558_p3 = scmp.lt.s32.totalorder %s744_s24, %s744_s24 }
  0x33   : > { %p551_p8 = scmp.ne.s32.totalorder %s744_s24, %s550_s22  ;;  %p559_p5 = scmp.lt.s32.totalorder %s550_s22, %s550_s22 }
  0x35   : > { %p553_p12 = pnand %p551_p8, %p511_p13  ;;  %p560_p7 = por %p559_p5, %p558_p3 }
  0x37   : > { %p554_p0 = pneg %p553_p12 }
  0x39   : > { %p561_p10 = pnand %p560_p7, %p554_p0 }
  0x3b   : > { %564 = shalt.err (!%p561_p10)
}
  0x3c   : > { %458 = dma.hbm_to_vmem [thread:$0]  (!%p740_p11), %s970_s2, 1024, %s744_s24, [#allocation6]  }
  0x3d   : > { %p25_p13 = scmp.eq.s32.totalorder %s24_s27, 0  ;;  %s27_s6 = sadd.s32 1, %s661_s14 }
  0x3e   : > { %p34_p9 = scmp.ne.s32.totalorder %s661_s14, %s657_s13  ;;  %p35_p2 = scmp.eq.s32.totalorder %s665_s15, 0 }
  0x3f   : > { %s806_s25 = scalar_select %p25_p13, %s661_s14, %s27_s6  }
  0x40   : > { %p36_p1 = por %p35_p2, %p34_p9  ;;  %p979_p4 = scmp.eq.s32.totalorder %s712_s16, 1 }
  0x41   : > { %p469_p8 = scmp.lt.s32.totalorder %s665_s15, 2  ;;  %s154_s8 = sand.u32 1, %s661_s14  }
  0x42   : > { %p810_p6 = por %p979_p4, %p34_p9  ;;  %s425_s9 = sshll.u32 %s154_s8, 6 }
  0x43   : > { %s438_s10 = sshll.u32 %s665_s15, 10  ;;  %s158_s27 = scalar_lea.vmem [#allocation2], %s425_s9 }
  0x44   : > { %s820_s24 = scalar_lea.hbm %s968_s0, %s438_s10  ;;  %s166_s21 = sshll.u32 %s158_s27, 4  ;;  %s822_s21 = int_to_ptr.vmem [resolvable:$true] %s166_s21 }
  0x45   : > { %p824_p11 = pnand %p469_p8, %p36_p1  ;;  %s155_s28 = scalar_lea.sflag [#allocation3], %s154_s8 }
  0x46   : > { %s565_s29 = scalar_lea.hbm %s820_s24, 1024  ;;  %s570_s4 = scalar_lea.hbm %s968_s0, 2048 }
  0x47   : > { %p566_p12 = scmp.ne.s32.totalorder %s820_s24, %s565_s29  ;;  %p567_p0 = pneg %p824_p11 }
  0x48   : > { %p571_p7 = scmp.lt.u32.totalorder %s820_s24, %s968_s0  ;;  %p572_p10 = scmp.lt.u32.totalorder %s570_s4, %s565_s29 }
  0x49   : > { %p568_p3 = pnand %p567_p0, %p566_p12  ;;  %p574_p9 = scmp.lt.u32.totalorder %s565_s29, %s820_s24 }
  0x4a   : > { %p573_p13 = por %p572_p10, %p571_p7 }
  0x4b   : > { %p569_p5 = pneg %p568_p3 }
  0x4c   : > { %p575_p2 = por %p574_p9, %p573_p13 }
  0x4e   : > { %p576_p1 = pnand %p575_p2, %p569_p5 }
  0x50   : > { %579 = shalt.err (!%p576_p1)
}
  0x51   : > { %s580_s8 = scalar_lea.vmem %s822_s21, 1024  ;;  %s669_s9 = smov [#allocation2]  }
  0x52   : > { %p581_p4 = scmp.ne.s32.totalorder %s822_s21, %s580_s8  ;;  %s585_s10 = sshll.u32 %s669_s9, 4  ;;  %s586_s10 = int_to_ptr.vmem [resolvable:$false] %s585_s10 }
  0x53   : > { %s587_s11 = scalar_lea.vmem %s586_s10, 2048  ;;  %p588_p3 = scmp.lt.s32.totalorder %s822_s21, %s586_s10 }
  0x54   : > { %p583_p8 = pnand %p581_p4, %p567_p0  ;;  %p589_p7 = scmp.lt.s32.totalorder %s587_s11, %s580_s8 }
  0x56   : > { %p584_p12 = pneg %p583_p8  ;;  %p590_p10 = por %p589_p7, %p588_p3 }
  0x58   : > { %p591_p13 = pnand %p590_p10, %p584_p12 }
  0x5a   : > { %594 = shalt.err (!%p591_p13)
}
  0x5b   : > { %462 = dma.hbm_to_vmem [thread:$0]  (!%p824_p11), %s820_s24, 1024, %s822_s21, %s155_s28  }
  0x5c   : > { %p982_p5 = scmp.ne.s32.totalorder %s977_s20, 0 }
  0x5d   : > { %s856_s17 = sand.u32 (!%p982_p5), 1, %s657_s13   ;;  %p983_p0 = scmp.ne.s32.totalorder (!%p982_p5), %s975_s18, 0 }
  0x5e   : > { %175 = sbr.rel (%p982_p5) target bundleno = 310 (0x136), region = 32  ;;  %s429_s27 = sshll.u32 (!%p982_p5), %s856_s17, 6 }
  0x5f   : > { %s178_s29 = scalar_lea.sflag (!%p982_p5), [#allocation3], %s856_s17  ;;  %s181_s30 = scalar_lea.vmem (!%p982_p5), [#allocation2], %s429_s27 }
  0x65   : > { %640 = dma.done.wait (%p983_p0), %s178_s29, 1024  }
  0x66   : > { %642 = vsyncadd (%p983_p0), %s178_s29, 4294966272  ;;  %p984_p11 = scmp.eq.s32.totalorder %s712_s16, 0 }
  0x68   : > { %644 = dma.done.wait (%p984_p11), [#allocation6], 2048   ;;  %p985_p9 = pmov %p984_p11 }
  0x69   : > { %v870_v0 = vld [vmem:[%s181_s30] sm:$0xff]  ;;  %v872_v1 = vld [vmem:[%s181_s30 + $0x8] sm:$0xff]  ;;  %v874_v2 = vld [vmem:[%s181_s30 + $0x10] sm:$0xff]  ;;  %s439_s18 = sshll.u32 %s712_s16, 10  ;;  %s211_s20 = scalar_lea.vmem [#allocation8], %s429_s27 }
  0x6a   : > { %646 = vsyncadd (%p985_p9), [#allocation6], 4294965248  ;;  %v220_v3 = vadd.f32 %v872_v1, %v870_v0  ;;  %v230_v4 = vmul.f32 %v870_v0, %v870_v0  ;;  %v231_v5 = vmul.f32 %v872_v1, %v872_v1  ;;  %v232_v6 = vmul.f32 %v874_v2, %v874_v2  ;;  %v884_v7 = vld [vmem:[%s181_s30 + $0x18] sm:$0xff]  ;;  %v889_v11 = vld [vmem:[%s181_s30 + $0x20] sm:$0xff]  ;;  %s331_s24 = sshll.u32 %s211_s20, 4  ;;  %s924_s23 = scalar_lea.hbm %s971_s3, %s439_s18  ;;  %s926_s24 = int_to_ptr.vmem [resolvable:$true] %s331_s24 }
  0x6b   : > { %v233_v9 = vmul.f32 %v884_v7, %v884_v7  ;;  %v234_v13 = vmul.f32 %v889_v11, %v889_v11  ;;  %v894_v15 = vld [vmem:[%s181_s30 + $0x28] sm:$0xff]  ;;  %v899_v19 = vld [vmem:[%s181_s30 + $0x30] sm:$0xff]  ;;  %v904_v23 = vld [vmem:[%s181_s30 + $0x38] sm:$0xff]  ;;  %s317_s28 = scalar_lea.sflag [#allocation4], %s856_s17  ;;  %s595_s22 = scalar_lea.vmem %s926_s24, 1024 }
  0x6c   : > { %v221_v8 = vadd.f32 %v220_v3, %v874_v2  ;;  %v238_v10 = vadd.f32 %v231_v5, %v230_v4  ;;  %v235_v17 = vmul.f32 %v894_v15, %v894_v15  ;;  %v236_v21 = vmul.f32 %v899_v19, %v899_v19  ;;  %v252_v37 = vld [vmem:[#allocation5] sm:$0xff]  ;;  %v253_v38 = vld [vmem:[#allocation5 + $0x8] sm:$0xff]  ;;  %v254_v39 = vld [vmem:[#allocation5 + $0x10] sm:$0xff]  ;;  %p596_p2 = scmp.ne.s32.totalorder %s926_s24, %s595_s22  ;;  %s670_s4 = smov [#allocation8]  }
  0x6d   : > { %v237_v25 = vmul.f32 %v904_v23, %v904_v23  ;;  %v255_v40 = vld [vmem:[#allocation5 + $0x18] sm:$0xff]  ;;  %v256_v41 = vld [vmem:[#allocation5 + $0x20] sm:$0xff]  ;;  %v257_v42 = vld [vmem:[#allocation5 + $0x28] sm:$0xff]  ;;  %s599_s5 = sshll.u32 %s670_s4, 4  ;;  %s600_s5 = int_to_ptr.vmem [resolvable:$false] %s599_s5 }
  0x6e   : > { %v222_v12 = vadd.f32 %v221_v8, %v884_v7  ;;  %v239_v14 = vadd.f32 %v238_v10, %v232_v6  ;;  %v258_v43 = vld [vmem:[#allocation5 + $0x30] sm:$0xff]  ;;  %v259_v44 = vld [vmem:[#allocation5 + $0x38] sm:$0xff]  ;;  %v268_v50 = vld [vmem:[#allocation7] sm:$0xff]  ;;  %p597_p1 = pnand %p596_p2, %p810_p6  ;;  %s601_s6 = scalar_lea.vmem %s600_s5, 2048 }
  0x6f   : > { %v269_v51 = vld [vmem:[#allocation7 + $0x8] sm:$0xff]  ;;  %v270_v56 = vld [vmem:[#allocation7 + $0x10] sm:$0xff]  ;;  %v271_v57 = vld [vmem:[#allocation7 + $0x18] sm:$0xff]  ;;  %p602_p8 = scmp.lt.s32.totalorder %s926_s24, %s600_s5  ;;  %p603_p12 = scmp.lt.s32.totalorder %s601_s6, %s595_s22 }
  0x70   : > { %v223_v16 = vadd.f32 %v222_v12, %v889_v11  ;;  %v240_v18 = vadd.f32 %v239_v14, %v233_v9  ;;  %v272_v58 = vld [vmem:[#allocation7 + $0x20] sm:$0xff]  ;;  %v273_v59 = vld [vmem:[#allocation7 + $0x28] sm:$0xff]  ;;  %v274_v60 = vld [vmem:[#allocation7 + $0x30] sm:$0xff]  ;;  %p598_p4 = pneg %p597_p1 }
  0x71   : > { %v275_v61 = vld [vmem:[#allocation7 + $0x38] sm:$0xff]  ;;  %p604_p3 = por %p603_p12, %p602_p8 }
  0x72   : > { %v224_v20 = vadd.f32 %v223_v16, %v894_v15  ;;  %v241_v22 = vadd.f32 %v240_v18, %v234_v13 }
  0x73   : > { %p605_p7 = pnand %p604_p3, %p598_p4 }
  0x74   : > { %v225_v24 = vadd.f32 %v224_v20, %v899_v19  ;;  %v242_v26 = vadd.f32 %v241_v22, %v235_v17 }
  0x76   : > { %v226_v27 = vadd.f32 %v225_v24, %v904_v23  ;;  %v243_v28 = vadd.f32 %v242_v26, %v236_v21 }
  0x78   : > { %227 = vadd.xlane.f32.xlu0 %v226_v27  ;;  %v244_v29 = vadd.f32 %v243_v28, %v237_v25 }
  0x7c   : > { %245 = vadd.xlane.f32.xlu0 %v244_v29 }
 0x105   : > { %v228_v30 = vpop.xlane.xlu0 %227 }
 0x106   : > { %v229_v31 = vmul.f32 0.0009765625, %v228_v30 }
 0x108   : > { %v248_v33 = vmul.f32 %v229_v31, %v229_v31 }
 0x109   : > { %v246_v32 = vpop.xlane.xlu0 %245 }
 0x10a   : > { %v247_v34 = vmul.f32 0.0009765625, %v246_v32 }
 0x10c   : > { %v249_v35 = vsub.f32 %v247_v34, %v248_v33 }
 0x10e   : > { %v250_v36 = vadd.f32 1e-05, %v249_v35 }
 0x110   : > { %507 = vrsqrt.f32 %v250_v36 }
 0x11a   : > { %v508_v45 = vpop.eup %507 }
 0x11b   : > { %v260_v46 = vmul.f32 %v508_v45, %v252_v37  ;;  %v261_v47 = vmul.f32 %v508_v45, %v253_v38  ;;  %v262_v48 = vmul.f32 %v508_v45, %v254_v39  ;;  %v263_v49 = vmul.f32 %v508_v45, %v255_v40 }
 0x11c   : > { %v264_v52 = vmul.f32 %v508_v45, %v256_v41  ;;  %v265_v53 = vmul.f32 %v508_v45, %v257_v42  ;;  %v266_v54 = vmul.f32 %v508_v45, %v258_v43  ;;  %v267_v55 = vmul.f32 %v508_v45, %v259_v44 }
 0x11d   : > { %v276_v62 = vmul.f32 %v260_v46, %v229_v31  ;;  %v277_v63 = vmul.f32 %v261_v47, %v229_v31  ;;  %v278_v3 = vmul.f32 %v262_v48, %v229_v31  ;;  %v279_v4 = vmul.f32 %v263_v49, %v229_v31 }
 0x11e   : > { %v280_v5 = vmul.f32 %v264_v52, %v229_v31  ;;  %v281_v6 = vmul.f32 %v265_v53, %v229_v31  ;;  %v282_v8 = vmul.f32 %v266_v54, %v229_v31  ;;  %v283_v9 = vmul.f32 %v267_v55, %v229_v31 }
 0x11f   : > { %v284_v10 = vsub.f32 %v268_v50, %v276_v62  ;;  %v285_v12 = vsub.f32 %v269_v51, %v277_v63  ;;  %v286_v13 = vsub.f32 %v270_v56, %v278_v3  ;;  %v287_v14 = vsub.f32 %v271_v57, %v279_v4 }
 0x120   : > { %v288_v16 = vsub.f32 %v272_v58, %v280_v5  ;;  %v289_v17 = vsub.f32 %v273_v59, %v281_v6  ;;  %v290_v18 = vsub.f32 %v274_v60, %v282_v8  ;;  %v291_v20 = vsub.f32 %v275_v61, %v283_v9 }
 0x121   : > { %v292_v21 = vmul.f32 %v260_v46, %v870_v0  ;;  %v293_v22 = vmul.f32 %v261_v47, %v872_v1  ;;  %v294_v24 = vmul.f32 %v262_v48, %v874_v2  ;;  %v295_v25 = vmul.f32 %v263_v49, %v884_v7 }
 0x122   : > { %v296_v26 = vmul.f32 %v264_v52, %v889_v11  ;;  %v297_v27 = vmul.f32 %v265_v53, %v894_v15  ;;  %v298_v28 = vmul.f32 %v266_v54, %v899_v19  ;;  %v299_v29 = vmul.f32 %v267_v55, %v904_v23 }
 0x123   : > { %v300_v30 = vadd.f32 %v292_v21, %v284_v10  ;;  %v301_v0 = vadd.f32 %v293_v22, %v285_v12  ;;  %v302_v31 = vadd.f32 %v294_v24, %v286_v13  ;;  %v303_v1 = vadd.f32 %v295_v25, %v287_v14 }
 0x124   : > { %v304_v2 = vadd.f32 %v296_v26, %v288_v16  ;;  %v305_v32 = vadd.f32 %v297_v27, %v289_v17  ;;  %v306_v7 = vadd.f32 %v298_v28, %v290_v18  ;;  %v307_v33 = vadd.f32 %v299_v29, %v291_v20 }
 0x125   : > { %308 = vst [vmem:[%s211_s20] sm:$0xff] %v300_v30  ;;  %309 = vst [vmem:[%s211_s20 + $0x8] sm:$0xff] %v301_v0 }
 0x126   : > { %310 = vst [vmem:[%s211_s20 + $0x10] sm:$0xff] %v302_v31  ;;  %311 = vst [vmem:[%s211_s20 + $0x18] sm:$0xff] %v303_v1 }
 0x127   : > { %312 = vst [vmem:[%s211_s20 + $0x20] sm:$0xff] %v304_v2  ;;  %313 = vst [vmem:[%s211_s20 + $0x28] sm:$0xff] %v305_v32 }
 0x128   : > { %314 = vst [vmem:[%s211_s20 + $0x30] sm:$0xff] %v306_v7  ;;  %315 = vst [vmem:[%s211_s20 + $0x38] sm:$0xff] %v307_v33 }
 0x129   : > { %608 = shalt.err (!%p605_p7)
}
 0x12a   : > { %s609_s8 = scalar_lea.hbm %s924_s23, 1024  ;;  %s613_s11 = scalar_lea.hbm %s971_s3, 2048 }
 0x12b   : > { %p610_p10 = scmp.ne.s32.totalorder %s924_s23, %s609_s8  ;;  %p614_p0 = scmp.lt.u32.totalorder %s924_s23, %s971_s3 }
 0x12c   : > { %p615_p11 = scmp.lt.u32.totalorder %s613_s11, %s609_s8  ;;  %p617_p2 = scmp.lt.u32.totalorder %s609_s8, %s924_s23 }
 0x12d   : > { %p611_p13 = pnand %p610_p10, %p810_p6 }
 0x12e   : > { %p616_p9 = por %p615_p11, %p614_p0 }
 0x12f   : > { %p612_p5 = pneg %p611_p13 }
 0x130   : > { %p618_p1 = por %p617_p2, %p616_p9 }
 0x132   : > { %p619_p4 = pnand %p618_p1, %p612_p5 }
 0x134   : > { %622 = shalt.err (!%p619_p4)
}
 0x135   : > { %450 = dma.vmem_to_hbm [thread:$0]  (%p810_p6), %s926_s24, 1024, %s924_s23, %s317_s28  }
 0x136 PF: > { %s343_s29 = sand.u32 1, %s653_s12   ;;  %p986_p8 = scmp.ne.s32.totalorder %s976_s19, 0 }
 0x137   : > { %p987_p12 = scmp.ge.s32.totalorder %s665_s15, 2  ;;  %s344_s30 = scalar_lea.sflag [#allocation4], %s343_s29 }
 0x139   : > { %p464_p3 = pnand %p987_p12, %p986_p8 }
 0x13b   : > { %648 = dma.done.wait (!%p464_p3), %s344_s30, 1024  }
 0x13c   : > { %650 = vsyncadd (!%p464_p3), %s344_s30, 4294966272  ;;  %p17_p7 = scmp.ge.s32.totalorder %s747_s26, 4   ;;  %s988_s12 = smov %s657_s13 }
 0x13d   : > { %s989_s13 = smov %s661_s14  ;;  %s990_s14 = smov %s806_s25 }
 0x13e   : > { %s991_s15 = smov %s747_s26  ;;  %19 = sbr.rel (!%p17_p7) target bundleno = 6 (0x6), region = 85 }
 0x145   :  { %349 = vsyncpa [#allocation3], 1 }
 0x146   :  { %351 = vsyncpa [#allocation3 + $0x1], 1 }
 0x147   :  { %352 = vsyncpa [#allocation6], 1 }
 0x148   :  { %353 = vsyncpa [#allocation4], 1 }
 0x149   :  { %355 = vsyncpa [#allocation4 + $0x1], 1 }

</bundles_post_ra>
